<compile_context>
chip_gen: v7x
topology: tpu7x:2x2x1
jax: 0.10.0
libtpu: 0.0.40
codegen_flags: <defaults>
</compile_context>

<pallas_src>
import functools

import jax
import jax.numpy as jnp
import numpy as np
from jax import lax
from jax.experimental import pallas as pl
from jax.experimental.pallas import tpu as pltpu


def _round_up(n, m):
    return ((n + m - 1) // m) * m


def ltc_rnn_kernel(T, x_ref, wih_ref, whh_ref, b_ref, wfc_ref, bfc_ref,
                   out_ref, pre_ref):
    """Whole sequence in one kernel invocation.

    x_ref   : (T*Bp, Dp)  time-major, batch-padded, flattened input
    wih_ref : (Dp, Hp)    W_ih^T   (zero-padded)
    whh_ref : (Hp, Hp)    W_hh^T   (zero-padded rows/cols)
    b_ref   : (1, Hp)     b_ih + b_hh (zero-padded)
    wfc_ref : (Hp, Op)    W_fc^T   (zero-padded)
    bfc_ref : (1, Op)     b_fc     (zero-padded)
    out_ref : (Bp, Op)    fc(hidden[-1])
    pre_ref : (T*Bp, Hp)  VMEM scratch: hoisted input projection
    """
    Bp = out_ref.shape[0]
    Hp = whh_ref.shape[0]

    # --- Hoisted input projection: one batched matmul for all timesteps. ---
    pre_ref[...] = (
        jnp.dot(x_ref[...], wih_ref[...], preferred_element_type=jnp.float32)
        + b_ref[...]
    )

    # --- Serial recurrence; h is carried in registers. ---
    def step(t, h):
        row = pl.multiple_of(t * Bp, Bp)
        pre_t = pre_ref[pl.ds(row, Bp), :]                       # (Bp, Hp)
        return jnp.tanh(
            pre_t
            + jnp.dot(h, whh_ref[...], preferred_element_type=jnp.float32)
        )

    h0 = jnp.zeros((Bp, Hp), jnp.float32)     # PyTorch default h_0 = 0
    # Fully unroll short sequences (gives the LLO scheduler visibility);
    # bound code size for long ones.
    unroll = True if T <= 32 else 8
    h = lax.fori_loop(0, T, step, h0, unroll=unroll)

    # --- Final fc on hidden[-1]; lane-dense (Bp, Op) store. ---
    out_ref[...] = (
        jnp.dot(h, wfc_ref[...], preferred_element_type=jnp.float32)
        + bfc_ref[...]
    )


def ltc_rnn_forward(x_btd, w_ih, w_hh, b_ih, b_hh, w_fc, b_fc):
    """x_btd: (B, T, D) batch_first input (matches the PyTorch module)."""
    B, T, D = x_btd.shape
    H = w_ih.shape[0]
    O = w_fc.shape[0]

    # Lane/sublane-friendly padded sizes.
    Bp = _round_up(B, 8)
    Dp = _round_up(D, 128)
    Hp = _round_up(H, 128)
    Op = _round_up(O, 128)

    f32 = jnp.float32

    # Time-major, batch/feature-padded, flattened to (T*Bp, Dp):
    # row t*Bp + b corresponds to (t, b).
    x_tbd = jnp.transpose(x_btd.astype(f32), (1, 0, 2))           # (T, B, D)
    x_tbd = jnp.pad(x_tbd, ((0, 0), (0, Bp - B), (0, Dp - D)))    # (T, Bp, Dp)
    x2d = x_tbd.reshape(T * Bp, Dp)

    wih_t = jnp.pad(jnp.transpose(w_ih).astype(f32),
                    ((0, Dp - D), (0, Hp - H)))                   # (Dp, Hp)
    whh_t = jnp.pad(jnp.transpose(w_hh).astype(f32),
                    ((0, Hp - H), (0, Hp - H)))                   # (Hp, Hp)
    b = jnp.pad((b_ih + b_hh).astype(f32), (0, Hp - H)).reshape(1, Hp)
    wfc_t = jnp.pad(jnp.transpose(w_fc).astype(f32),
                    ((0, Hp - H), (0, Op - O)))                   # (Hp, Op)
    bfc = jnp.pad(b_fc.astype(f32), (0, Op - O)).reshape(1, Op)   # (1, Op)

    vmem = pl.BlockSpec(memory_space=pltpu.MemorySpace.VMEM)

    out_padded = pl.pallas_call(
        functools.partial(ltc_rnn_kernel, T),
        out_shape=jax.ShapeDtypeStruct((Bp, Op), f32),
        in_specs=[vmem] * 6,
        out_specs=vmem,
        scratch_shapes=[pltpu.VMEM((T * Bp, Hp), f32)],
    )(x2d, wih_t, whh_t, b, wfc_t, bfc)

    return out_padded[:B, :O]


def reference_forward(x_btd, w_ih, w_hh, b_ih, b_hh, w_fc, b_fc):
    """Pure-JAX reference mirroring torch.nn.RNN + Linear."""
    B, T, D = x_btd.shape
    H = w_ih.shape[0]
    h = jnp.zeros((B, H), jnp.float32)
    for t in range(T):
        x_t = x_btd[:, t, :]
        h = jnp.tanh(x_t @ w_ih.T + b_ih + h @ w_hh.T + b_hh)
    return h @ w_fc.T + b_fc


if __name__ == "__main__":
    # Small shapes consistent with the module's forward.
    B, T, D, H, O = 2, 8, 4, 32, 1

    key = jax.random.PRNGKey(0)
    keys = jax.random.split(key, 7)
    bound = 1.0 / np.sqrt(H)

    # Deterministic parameter init (PyTorch-style uniform(-1/sqrt(H), 1/sqrt(H))).
    w_ih = jax.random.uniform(keys[0], (H, D), jnp.float32, -bound, bound)
    w_hh = jax.random.uniform(keys[1], (H, H), jnp.float32, -bound, bound)
    b_ih = jax.random.uniform(keys[2], (H,), jnp.float32, -bound, bound)
    b_hh = jax.random.uniform(keys[3], (H,), jnp.float32, -bound, bound)
    w_fc = jax.random.uniform(keys[4], (O, H), jnp.float32, -bound, bound)
    b_fc = jax.random.uniform(keys[5], (O,), jnp.float32, -bound, bound)

    x = jax.random.normal(keys[6], (B, T, D), jnp.float32)

    out = ltc_rnn_forward(x, w_ih, w_hh, b_ih, b_hh, w_fc, b_fc)
    out = jax.block_until_ready(out)

    ref = reference_forward(x, w_ih, w_hh, b_ih, b_hh, w_fc, b_fc)
    np.testing.assert_allclose(np.asarray(out), np.asarray(ref),
                               rtol=1e-5, atol=1e-5)

    print("KERNEL_OK")
</pallas_src>

<mosaic_0001>
module attributes {stable_mosaic.version = 11 : i64} {
  func.func @ltc_rnn_kernel(%arg0: memref<64x128xf32, #tpu.memory_space<vmem>>, %arg1: memref<128x128xf32, #tpu.memory_space<vmem>>, %arg2: memref<128x128xf32, #tpu.memory_space<vmem>>, %arg3: memref<1x128xf32, #tpu.memory_space<vmem>>, %arg4: memref<128x128xf32, #tpu.memory_space<vmem>>, %arg5: memref<1x128xf32, #tpu.memory_space<vmem>>, %arg6: memref<8x128xf32, #tpu.memory_space<vmem>>, %arg7: memref<64x128xf32, #tpu.memory_space<vmem>>) attributes {dimension_semantics = [], scalar_prefetch = 0 : i64, scratch_operands = 1 : i64, tpu.core_type = #tpu.core_type<tc>} {
    %c0 = arith.constant 0 : index
    %c0_0 = arith.constant 0 : index
    %0 = vector.load %arg0[%c0, %c0_0] : memref<64x128xf32, #tpu.memory_space<vmem>>, vector<64x128xf32>
    %c0_1 = arith.constant 0 : index
    %c0_2 = arith.constant 0 : index
    %1 = vector.load %arg1[%c0_1, %c0_2] : memref<128x128xf32, #tpu.memory_space<vmem>>, vector<128x128xf32>
    %cst = arith.constant dense<0.000000e+00> : vector<64x128xf32>
    %2 = tpu.matmul %0, %1, %cst {dimension_numbers = #tpu.dot_dimension_numbers<[1], [0], [0], [1], [0, 0, 1, 1], [], []>} : vector<64x128xf32>, vector<128x128xf32>, vector<64x128xf32> -> vector<64x128xf32>
    %c0_3 = arith.constant 0 : index
    %c0_4 = arith.constant 0 : index
    %3 = vector.load %arg3[%c0_3, %c0_4] : memref<1x128xf32, #tpu.memory_space<vmem>>, vector<1x128xf32>
    %4 = vector.broadcast %3 : vector<1x128xf32> to vector<64x128xf32>
    %5 = arith.addf %2, %4 : vector<64x128xf32>
    %c0_5 = arith.constant 0 : index
    %c0_6 = arith.constant 0 : index
    %6 = vector.load %arg7[%c0_5, %c0_6] : memref<64x128xf32, #tpu.memory_space<vmem>>, vector<64x128xf32>
    tpu.vector_store %arg7[%c0_5, %c0_6], %5 {strides = array<i32>} : memref<64x128xf32, #tpu.memory_space<vmem>>, vector<64x128xf32>,
    %cst_7 = arith.constant 0.000000e+00 : f32
    %7 = vector.broadcast %cst_7 : f32 to vector<8x128xf32>
    %c0_i32 = arith.constant 0 : i32
    %c8_i32 = arith.constant 8 : i32
    %8 = arith.muli %c0_i32, %c8_i32 : i32
    %9 = tpu.assume_multiple %8, 8 : i32
    %10 = arith.index_cast %9 : i32 to index
    %c0_8 = arith.constant 0 : index
    %11 = vector.load %arg7[%10, %c0_8] : memref<64x128xf32, #tpu.memory_space<vmem>>, vector<8x128xf32>
    %c0_9 = arith.constant 0 : index
    %c0_10 = arith.constant 0 : index
    %12 = vector.load %arg2[%c0_9, %c0_10] : memref<128x128xf32, #tpu.memory_space<vmem>>, vector<128x128xf32>
    %cst_11 = arith.constant dense<0.000000e+00> : vector<8x128xf32>
    %13 = tpu.matmul %7, %12, %cst_11 {dimension_numbers = #tpu.dot_dimension_numbers<[1], [0], [0], [1], [0, 0, 1, 1], [], []>} : vector<8x128xf32>, vector<128x128xf32>, vector<8x128xf32> -> vector<8x128xf32>
    %14 = arith.addf %11, %13 : vector<8x128xf32>
    %15 = math.tanh %14 : vector<8x128xf32>
    %c1_i32 = arith.constant 1 : i32
    %c8_i32_12 = arith.constant 8 : i32
    %16 = arith.muli %c1_i32, %c8_i32_12 : i32
    %17 = tpu.assume_multiple %16, 8 : i32
    %18 = arith.index_cast %17 : i32 to index
    %c0_13 = arith.constant 0 : index
    %19 = vector.load %arg7[%18, %c0_13] : memref<64x128xf32, #tpu.memory_space<vmem>>, vector<8x128xf32>
    %c0_14 = arith.constant 0 : index
    %c0_15 = arith.constant 0 : index
    %20 = vector.load %arg2[%c0_14, %c0_15] : memref<128x128xf32, #tpu.memory_space<vmem>>, vector<128x128xf32>
    %cst_16 = arith.constant dense<0.000000e+00> : vector<8x128xf32>
    %21 = tpu.matmul %15, %20, %cst_16 {dimension_numbers = #tpu.dot_dimension_numbers<[1], [0], [0], [1], [0, 0, 1, 1], [], []>} : vector<8x128xf32>, vector<128x128xf32>, vector<8x128xf32> -> vector<8x128xf32>
    %22 = arith.addf %19, %21 : vector<8x128xf32>
    %23 = math.tanh %22 : vector<8x128xf32>
    %c2_i32 = arith.constant 2 : i32
    %c8_i32_17 = arith.constant 8 : i32
    %24 = arith.muli %c2_i32, %c8_i32_17 : i32
    %25 = tpu.assume_multiple %24, 8 : i32
    %26 = arith.index_cast %25 : i32 to index
    %c0_18 = arith.constant 0 : index
    %27 = vector.load %arg7[%26, %c0_18] : memref<64x128xf32, #tpu.memory_space<vmem>>, vector<8x128xf32>
    %c0_19 = arith.constant 0 : index
    %c0_20 = arith.constant 0 : index
    %28 = vector.load %arg2[%c0_19, %c0_20] : memref<128x128xf32, #tpu.memory_space<vmem>>, vector<128x128xf32>
    %cst_21 = arith.constant dense<0.000000e+00> : vector<8x128xf32>
    %29 = tpu.matmul %23, %28, %cst_21 {dimension_numbers = #tpu.dot_dimension_numbers<[1], [0], [0], [1], [0, 0, 1, 1], [], []>} : vector<8x128xf32>, vector<128x128xf32>, vector<8x128xf32> -> vector<8x128xf32>
    %30 = arith.addf %27, %29 : vector<8x128xf32>
    %31 = math.tanh %30 : vector<8x128xf32>
    %c3_i32 = arith.constant 3 : i32
    %c8_i32_22 = arith.constant 8 : i32
    %32 = arith.muli %c3_i32, %c8_i32_22 : i32
    %33 = tpu.assume_multiple %32, 8 : i32
    %34 = arith.index_cast %33 : i32 to index
    %c0_23 = arith.constant 0 : index
    %35 = vector.load %arg7[%34, %c0_23] : memref<64x128xf32, #tpu.memory_space<vmem>>, vector<8x128xf32>
    %c0_24 = arith.constant 0 : index
    %c0_25 = arith.constant 0 : index
    %36 = vector.load %arg2[%c0_24, %c0_25] : memref<128x128xf32, #tpu.memory_space<vmem>>, vector<128x128xf32>
    %cst_26 = arith.constant dense<0.000000e+00> : vector<8x128xf32>
    %37 = tpu.matmul %31, %36, %cst_26 {dimension_numbers = #tpu.dot_dimension_numbers<[1], [0], [0], [1], [0, 0, 1, 1], [], []>} : vector<8x128xf32>, vector<128x128xf32>, vector<8x128xf32> -> vector<8x128xf32>
    %38 = arith.addf %35, %37 : vector<8x128xf32>
    %39 = math.tanh %38 : vector<8x128xf32>
    %c4_i32 = arith.constant 4 : i32
    %c8_i32_27 = arith.constant 8 : i32
    %40 = arith.muli %c4_i32, %c8_i32_27 : i32
    %41 = tpu.assume_multiple %40, 8 : i32
    %42 = arith.index_cast %41 : i32 to index
    %c0_28 = arith.constant 0 : index
    %43 = vector.load %arg7[%42, %c0_28] : memref<64x128xf32, #tpu.memory_space<vmem>>, vector<8x128xf32>
    %c0_29 = arith.constant 0 : index
    %c0_30 = arith.constant 0 : index
    %44 = vector.load %arg2[%c0_29, %c0_30] : memref<128x128xf32, #tpu.memory_space<vmem>>, vector<128x128xf32>
    %cst_31 = arith.constant dense<0.000000e+00> : vector<8x128xf32>
    %45 = tpu.matmul %39, %44, %cst_31 {dimension_numbers = #tpu.dot_dimension_numbers<[1], [0], [0], [1], [0, 0, 1, 1], [], []>} : vector<8x128xf32>, vector<128x128xf32>, vector<8x128xf32> -> vector<8x128xf32>
    %46 = arith.addf %43, %45 : vector<8x128xf32>
    %47 = math.tanh %46 : vector<8x128xf32>
    %c5_i32 = arith.constant 5 : i32
    %c8_i32_32 = arith.constant 8 : i32
    %48 = arith.muli %c5_i32, %c8_i32_32 : i32
    %49 = tpu.assume_multiple %48, 8 : i32
    %50 = arith.index_cast %49 : i32 to index
    %c0_33 = arith.constant 0 : index
    %51 = vector.load %arg7[%50, %c0_33] : memref<64x128xf32, #tpu.memory_space<vmem>>, vector<8x128xf32>
    %c0_34 = arith.constant 0 : index
    %c0_35 = arith.constant 0 : index
    %52 = vector.load %arg2[%c0_34, %c0_35] : memref<128x128xf32, #tpu.memory_space<vmem>>, vector<128x128xf32>
    %cst_36 = arith.constant dense<0.000000e+00> : vector<8x128xf32>
    %53 = tpu.matmul %47, %52, %cst_36 {dimension_numbers = #tpu.dot_dimension_numbers<[1], [0], [0], [1], [0, 0, 1, 1], [], []>} : vector<8x128xf32>, vector<128x128xf32>, vector<8x128xf32> -> vector<8x128xf32>
    %54 = arith.addf %51, %53 : vector<8x128xf32>
    %55 = math.tanh %54 : vector<8x128xf32>
    %c6_i32 = arith.constant 6 : i32
    %c8_i32_37 = arith.constant 8 : i32
    %56 = arith.muli %c6_i32, %c8_i32_37 : i32
    %57 = tpu.assume_multiple %56, 8 : i32
    %58 = arith.index_cast %57 : i32 to index
    %c0_38 = arith.constant 0 : index
    %59 = vector.load %arg7[%58, %c0_38] : memref<64x128xf32, #tpu.memory_space<vmem>>, vector<8x128xf32>
    %c0_39 = arith.constant 0 : index
    %c0_40 = arith.constant 0 : index
    %60 = vector.load %arg2[%c0_39, %c0_40] : memref<128x128xf32, #tpu.memory_space<vmem>>, vector<128x128xf32>
    %cst_41 = arith.constant dense<0.000000e+00> : vector<8x128xf32>
    %61 = tpu.matmul %55, %60, %cst_41 {dimension_numbers = #tpu.dot_dimension_numbers<[1], [0], [0], [1], [0, 0, 1, 1], [], []>} : vector<8x128xf32>, vector<128x128xf32>, vector<8x128xf32> -> vector<8x128xf32>
    %62 = arith.addf %59, %61 : vector<8x128xf32>
    %63 = math.tanh %62 : vector<8x128xf32>
    %c7_i32 = arith.constant 7 : i32
    %c8_i32_42 = arith.constant 8 : i32
    %64 = arith.muli %c7_i32, %c8_i32_42 : i32
    %65 = tpu.assume_multiple %64, 8 : i32
    %66 = arith.index_cast %65 : i32 to index
    %c0_43 = arith.constant 0 : index
    %67 = vector.load %arg7[%66, %c0_43] : memref<64x128xf32, #tpu.memory_space<vmem>>, vector<8x128xf32>
    %c0_44 = arith.constant 0 : index
    %c0_45 = arith.constant 0 : index
    %68 = vector.load %arg2[%c0_44, %c0_45] : memref<128x128xf32, #tpu.memory_space<vmem>>, vector<128x128xf32>
    %cst_46 = arith.constant dense<0.000000e+00> : vector<8x128xf32>
    %69 = tpu.matmul %63, %68, %cst_46 {dimension_numbers = #tpu.dot_dimension_numbers<[1], [0], [0], [1], [0, 0, 1, 1], [], []>} : vector<8x128xf32>, vector<128x128xf32>, vector<8x128xf32> -> vector<8x128xf32>
    %70 = arith.addf %67, %69 : vector<8x128xf32>
    %71 = math.tanh %70 : vector<8x128xf32>
    %c8_i32_47 = arith.constant 8 : i32
    %c0_48 = arith.constant 0 : index
    %c0_49 = arith.constant 0 : index
    %72 = vector.load %arg4[%c0_48, %c0_49] : memref<128x128xf32, #tpu.memory_space<vmem>>, vector<128x128xf32>
    %cst_50 = arith.constant dense<0.000000e+00> : vector<8x128xf32>
    %73 = tpu.matmul %71, %72, %cst_50 {dimension_numbers = #tpu.dot_dimension_numbers<[1], [0], [0], [1], [0, 0, 1, 1], [], []>} : vector<8x128xf32>, vector<128x128xf32>, vector<8x128xf32> -> vector<8x128xf32>
    %c0_51 = arith.constant 0 : index
    %c0_52 = arith.constant 0 : index
    %74 = vector.load %arg5[%c0_51, %c0_52] : memref<1x128xf32, #tpu.memory_space<vmem>>, vector<1x128xf32>
    %75 = vector.broadcast %74 : vector<1x128xf32> to vector<8x128xf32>
    %76 = arith.addf %73, %75 : vector<8x128xf32>
    %c0_53 = arith.constant 0 : index
    %c0_54 = arith.constant 0 : index
    %77 = vector.load %arg6[%c0_53, %c0_54] : memref<8x128xf32, #tpu.memory_space<vmem>>, vector<8x128xf32>
    tpu.vector_store %arg6[%c0_53, %c0_54], %76 {strides = array<i32>} : memref<8x128xf32, #tpu.memory_space<vmem>>, vector<8x128xf32>,
    return
  }
}

</mosaic_0001>

<bundles_post_ra>
// kernel: tpu_custom_call.1
= control target key start
LH: loop header
LB: loop body
LE: loop exit
PB: predicated region body
PF: predicated region fallthrough
CT: control target
= control target key end

     0   :  { %11 = vsyncpa [#allocation4], 0  ;;  %s2201_s0 = inlined_call_operand.hbm [shape: f32[64,128], index: 0, kind: input, shape index: {}]   ;;  %s2202_s1 = inlined_call_operand.hbm [shape: f32[128,128], index: 1, kind: input, shape index: {}]   ;;  %s2203_s2 = inlined_call_operand.hbm [shape: f32[128,128], index: 2, kind: input, shape index: {}]   ;;  %s2204_s3 = inlined_call_operand.vmem [shape: f32[1,128], index: 3, kind: input, shape index: {}]   ;;  %s2205_s4 = inlined_call_operand.hbm [shape: f32[128,128], index: 4, kind: input, shape index: {}]   ;;  %s2206_s5 = inlined_call_operand.vmem [shape: f32[1,128], index: 5, kind: input, shape index: {}]   ;;  %s2207_s6 = inlined_call_operand.hbm [shape: f32[8,128], index: 6, kind: output, shape index: {}]  }
   0x1   :  { %12 = vsyncpa [#allocation7], 0 }
   0x2   :  { %13 = vsyncpa [#allocation10], 0 }
   0x3   :  { %14 = vsyncpa [#allocation5], 0  ;;  %s1871_s21 = smov [#allocation6]   ;;  %s1872_s23 = smov [#allocation3]  }
   0x4   :  { %s32_s22 = sshll.u32 %s1871_s21, 4  ;;  %s20_s24 = sshll.u32 %s1872_s23, 4  ;;  %s33_s22 = int_to_ptr.vmem [resolvable:$true] %s32_s22  ;;  %s1916_s24 = int_to_ptr.vmem [resolvable:$true] %s20_s24 }
   0x5   :  { %s1753_s27 = scalar_lea.hbm %s2202_s1, 2048 }
   0x6   :  { %p1754_p0 = scmp.ne.s32.totalorder %s2202_s1, %s1753_s27  ;;  %p1757_p1 = scmp.lt.u32.totalorder %s1753_s27, %s2202_s1 }
   0x8   :  { %p1759_p2 = pnand %p1757_p1, %p1754_p0 }
   0xa   :  { %1762 = shalt.err (!%p1759_p2)
}
   0xb   :  { %s1763_s8 = scalar_lea.vmem %s33_s22, 2048  ;;  %p1768_p4 = scmp.lt.s32.totalorder %s33_s22, %s33_s22 }
   0xc   :  { %p1764_p3 = scmp.ne.s32.totalorder %s33_s22, %s1763_s8  ;;  %p1769_p5 = scmp.lt.s32.totalorder %s1763_s8, %s1763_s8 }
   0xe   :  { %p1770_p6 = por %p1769_p5, %p1768_p4 }
  0x10   :  { %p1771_p7 = pnand %p1770_p6, %p1764_p3 }
  0x12   :  { %1774 = shalt.err (!%p1771_p7)
}
  0x13   :  { %s1873_s9 = smov 128   ;;  %s1874_s10 = smov 8  }
  0x14   :  { %38 = dma.hbm_to_vmem [thread:$0]  %s2202_s1, 2048, %s33_s22, [#allocation7], %s1873_s9, %s1873_s9, %s1874_s10  }
  0x15   :  { %s1775_s15 = scalar_lea.hbm %s2201_s0, 1024 }
  0x16   :  { %p1776_p8 = scmp.ne.s32.totalorder %s2201_s0, %s1775_s15  ;;  %p1779_p9 = scmp.lt.u32.totalorder %s1775_s15, %s2201_s0 }
  0x18   :  { %p1781_p10 = pnand %p1779_p9, %p1776_p8 }
  0x1a   :  { %1784 = shalt.err (!%p1781_p10)
}
  0x1b   :  { %s1785_s20 = scalar_lea.vmem %s1916_s24, 1024  ;;  %p1790_p12 = scmp.lt.s32.totalorder %s1916_s24, %s1916_s24 }
  0x1c   :  { %p1786_p11 = scmp.ne.s32.totalorder %s1916_s24, %s1785_s20  ;;  %p1791_p13 = scmp.lt.s32.totalorder %s1785_s20, %s1785_s20 }
  0x1e   :  { %p1792_p0 = por %p1791_p13, %p1790_p12 }
  0x20   :  { %p1793_p1 = pnand %p1792_p0, %p1786_p11 }
  0x22   :  { %1796 = shalt.err (!%p1793_p1)
}
  0x23   :  { %26 = dma.hbm_to_vmem [thread:$0]  %s2201_s0, 1024, %s1916_s24, [#allocation4], %s1873_s9, %s1873_s9, %s1874_s10  }
  0x24   :  { %s1875_s22 = smov [#allocation8]   ;;  %s1876_s25 = smov [#allocation9]  }
  0x25   :  { %s44_s23 = sshll.u32 %s1875_s22, 4  ;;  %s58_s26 = sshll.u32 %s1876_s25, 4  ;;  %s45_s23 = int_to_ptr.vmem [resolvable:$true] %s44_s23  ;;  %s1953_s26 = int_to_ptr.vmem [resolvable:$true] %s58_s26 }
  0x26   :  { %s1797_s29 = scalar_lea.hbm %s2203_s2, 2048 }
  0x27   :  { %p1798_p2 = scmp.ne.s32.totalorder %s2203_s2, %s1797_s29  ;;  %p1801_p3 = scmp.lt.u32.totalorder %s1797_s29, %s2203_s2 }
  0x29   :  { %p1803_p4 = pnand %p1801_p3, %p1798_p2 }
  0x2b   :  { %1806 = shalt.err (!%p1803_p4)
}
  0x2c   :  { %s1807_s0 = scalar_lea.vmem %s45_s23, 2048  ;;  %p1812_p6 = scmp.lt.s32.totalorder %s45_s23, %s45_s23 }
  0x2d   :  { %p1808_p5 = scmp.ne.s32.totalorder %s45_s23, %s1807_s0  ;;  %p1813_p7 = scmp.lt.s32.totalorder %s1807_s0, %s1807_s0 }
  0x2f   :  { %p1814_p8 = por %p1813_p7, %p1812_p6 }
  0x31   :  { %p1815_p9 = pnand %p1814_p8, %p1808_p5 }
  0x33   :  { %1818 = shalt.err (!%p1815_p9)
}
  0x34   :  { %50 = dma.hbm_to_vmem [thread:$0]  %s2203_s2, 2048, %s45_s23, [#allocation7], %s1873_s9, %s1873_s9, %s1874_s10  }
  0x35   :  { %s1819_s15 = scalar_lea.hbm %s2205_s4, 2048 }
  0x36   :  { %p1820_p10 = scmp.ne.s32.totalorder %s2205_s4, %s1819_s15  ;;  %p1823_p11 = scmp.lt.u32.totalorder %s1819_s15, %s2205_s4 }
  0x38   :  { %p1825_p12 = pnand %p1823_p11, %p1820_p10 }
  0x3a   :  { %1828 = shalt.err (!%p1825_p12)
}
  0x3b   :  { %s1829_s20 = scalar_lea.vmem %s1953_s26, 2048  ;;  %p1834_p0 = scmp.lt.s32.totalorder %s1953_s26, %s1953_s26 }
  0x3c   :  { %p1830_p13 = scmp.ne.s32.totalorder %s1953_s26, %s1829_s20  ;;  %p1835_p1 = scmp.lt.s32.totalorder %s1829_s20, %s1829_s20 }
  0x3e   :  { %p1836_p2 = por %p1835_p1, %p1834_p0 }
  0x40   :  { %p1837_p3 = pnand %p1836_p2, %p1830_p13 }
  0x42   :  { %1840 = shalt.err (!%p1837_p3)
}
  0x43   :  { %64 = dma.hbm_to_vmem [thread:$0]  %s2205_s4, 2048, %s1953_s26, [#allocation10], %s1873_s9, %s1873_s9, %s1874_s10  }
  0x44   :  { %1863 = dma.done.wait [#allocation4], 1024  }
  0x45   :  { %1864 = vsyncadd [#allocation4], 4294966272 }
  0x46   :  { %1865 = dma.done.wait [#allocation7], 4096  }
  0x47   :  { %1866 = vsyncadd [#allocation7], 4294963200 }
  0x48   :  { %1867 = dma.done.wait [#allocation10], 2048  }
  0x49   :  { %1868 = vsyncadd [#allocation10], 4294965248  ;;  %v1877_v0 = vmov 0.0|0.0   ;;  %vm1878_vm0 = vmmov 0   ;;  %v1879_v1 = vmov 0.0   ;;  %v87_v2 = vld [vmem:[#allocation6] sm:$0xff] }
  0x4a   :  { %1511 = vmatprep.subr.bf16.mxu1 %v1877_v0  ;;  %1196 = vmatprep.mubr.msk.f32.mxu1 %vm1878_vm0, %v1879_v1  ;;  %v88_v3 = vld [vmem:[#allocation6 + $0x8] sm:$0xff]  ;;  %v224_v4 = vld [vmem:[#allocation8] sm:$0xff]  ;;  %v89_v7 = vld [vmem:[#allocation6 + $0x10] sm:$0xff]  ;;  %s1880_s21 = smov [#allocation11]  }
  0x4b   :  { %v1479_v5 = vpack.c.bf16 %v88_v3, %v87_v2  ;;  %v225_v6 = vld [vmem:[#allocation8 + $0x8] sm:$0xff]  ;;  %v90_v8 = vld [vmem:[#allocation6 + $0x18] sm:$0xff]  ;;  %v226_v11 = vld [vmem:[#allocation8 + $0x10] sm:$0xff]  ;;  %s930_s22 = sshll.u32 %s1880_s21, 4  ;;  %s931_s22 = int_to_ptr.vmem [resolvable:$true] %s930_s22 }
  0x4c   :  { %v1993_v9 = vpack.c.bf16 %v225_v6, %v224_v4  ;;  %v1483_v10 = vpack.c.bf16 %v90_v8, %v89_v7  ;;  %v227_v12 = vld [vmem:[#allocation8 + $0x18] sm:$0xff]  ;;  %v91_v13 = vld [vmem:[#allocation6 + $0x20] sm:$0xff]  ;;  %v92_v14 = vld [vmem:[#allocation6 + $0x28] sm:$0xff]  ;;  %s1841_s23 = scalar_lea.vmem %s931_s22, 128  ;;  %p1846_p5 = scmp.lt.s32.totalorder %s931_s22, %s931_s22 }
  0x4d   :  { %1480 = vmatprep.subr.bf16.mxu0 %v1479_v5  ;;  %v1996_v15 = vpack.c.bf16 %v227_v12, %v226_v11  ;;  %v1487_v16 = vpack.c.bf16 %v92_v14, %v91_v13  ;;  %v228_v17 = vld [vmem:[#allocation8 + $0x20] sm:$0xff]  ;;  %v229_v18 = vld [vmem:[#allocation8 + $0x28] sm:$0xff]  ;;  %v93_v19 = vld [vmem:[#allocation6 + $0x30] sm:$0xff]  ;;  %p1842_p4 = scmp.ne.s32.totalorder %s931_s22, %s1841_s23  ;;  %p1847_p6 = scmp.lt.s32.totalorder %s1841_s23, %s1841_s23 }
  0x4e   :  { %1482 = vmatpush3.bf16.msra.mxu0 %v1479_v5  ;;  %1513 = vmatpush3.bf16.msra.mxu1 %v1993_v9  ;;  %v94_v20 = vld [vmem:[#allocation6 + $0x38] sm:$0xff]  ;;  %v2000_v21 = vpack.c.bf16 %v229_v18, %v228_v17  ;;  %v230_v23 = vld [vmem:[#allocation8 + $0x30] sm:$0xff]  ;;  %v95_v25 = vld [vmem:[#allocation6 + $0x40] sm:$0xff] }
  0x4f   :  { %1484 = vmatprep.subr.bf16.mxu0 %v1483_v10  ;;  %1514 = vmatprep.subr.bf16.mxu1 %v1877_v0  ;;  %v1491_v22 = vpack.c.bf16 %v94_v20, %v93_v19  ;;  %v231_v24 = vld [vmem:[#allocation8 + $0x38] sm:$0xff]  ;;  %v96_v26 = vld [vmem:[#allocation6 + $0x48] sm:$0xff]  ;;  %v79_v27 = vld [vmem:[#allocation3] sm:$0xff]  ;;  %p1848_p7 = por %p1847_p6, %p1846_p5 }
  0x50   :  { %1152 = vmatprep.mubr.f32.mxu0 %v79_v27  ;;  %v2004_v28 = vpack.c.bf16 %v231_v24, %v230_v23  ;;  %v1495_v29 = vpack.c.bf16 %v96_v26, %v95_v25  ;;  %v232_v30 = vld [vmem:[#allocation8 + $0x40] sm:$0xff]  ;;  %v233_v31 = vld [vmem:[#allocation8 + $0x48] sm:$0xff]  ;;  %v97_v32 = vld [vmem:[#allocation6 + $0x50] sm:$0xff] }
  0x51   :  { %v98_v33 = vld [vmem:[#allocation6 + $0x58] sm:$0xff]  ;;  %v2008_v34 = vpack.c.bf16 %v233_v31, %v232_v30  ;;  %v234_v36 = vld [vmem:[#allocation8 + $0x50] sm:$0xff]  ;;  %v99_v38 = vld [vmem:[#allocation6 + $0x60] sm:$0xff]  ;;  %p1849_p8 = pnand %p1848_p7, %p1842_p4 }
  0x52   :  { %1486 = vmatpush3.bf16.msra.mxu0 %v1483_v10  ;;  %1516 = vmatpush3.bf16.msra.mxu1 %v1996_v15  ;;  %v1499_v35 = vpack.c.bf16 %v98_v33, %v97_v32  ;;  %v235_v37 = vld [vmem:[#allocation8 + $0x58] sm:$0xff]  ;;  %v100_v39 = vld [vmem:[#allocation6 + $0x68] sm:$0xff]  ;;  %v236_v42 = vld [vmem:[#allocation8 + $0x60] sm:$0xff] }
  0x53   :  { %1488 = vmatprep.subr.bf16.mxu0 %v1487_v16  ;;  %1517 = vmatprep.subr.bf16.mxu1 %v1877_v0  ;;  %v2012_v40 = vpack.c.bf16 %v235_v37, %v234_v36  ;;  %v1503_v41 = vpack.c.bf16 %v100_v39, %v99_v38  ;;  %v237_v43 = vld [vmem:[#allocation8 + $0x68] sm:$0xff]  ;;  %v101_v44 = vld [vmem:[#allocation6 + $0x70] sm:$0xff]  ;;  %v102_v45 = vld [vmem:[#allocation6 + $0x78] sm:$0xff] }
  0x54   :  { %v2016_v46 = vpack.c.bf16 %v237_v43, %v236_v42  ;;  %v1507_v47 = vpack.c.bf16 %v102_v45, %v101_v44  ;;  %v238_v48 = vld [vmem:[#allocation8 + $0x70] sm:$0xff]  ;;  %v239_v49 = vld [vmem:[#allocation8 + $0x78] sm:$0xff]  ;;  %v80_v51 = vld [vmem:[#allocation3 + $0x8] sm:$0xff] }
  0x55   :  { %v2020_v50 = vpack.c.bf16 %v239_v49, %v238_v48  ;;  %v81_v52 = vld [vmem:[#allocation3 + $0x10] sm:$0xff]  ;;  %v82_v53 = vld [vmem:[#allocation3 + $0x18] sm:$0xff]  ;;  %v83_v54 = vld [vmem:[#allocation3 + $0x20] sm:$0xff] }
  0x56   :  { %1490 = vmatpush3.bf16.msra.mxu0 %v1487_v16  ;;  %1519 = vmatpush3.bf16.msra.mxu1 %v2000_v21  ;;  %v84_v55 = vld [vmem:[#allocation3 + $0x28] sm:$0xff]  ;;  %v85_v56 = vld [vmem:[#allocation3 + $0x30] sm:$0xff]  ;;  %v86_v57 = vld [vmem:[#allocation3 + $0x38] sm:$0xff] }
  0x57   :  { %1492 = vmatprep.subr.bf16.mxu0 %v1491_v22  ;;  %1520 = vmatprep.subr.bf16.mxu1 %v1877_v0  ;;  %v2066_v58 = vld [vmem:[%s2204_s3] ss:$0 sm:$0xff]  ;;  %v831_v36 = vld [vmem:[#allocation9 + $0x8] sm:$0xff]  ;;  %v832_v37 = vld [vmem:[#allocation9 + $0x10] sm:$0xff] }
  0x58   :  { %v833_v39 = vld [vmem:[#allocation9 + $0x18] sm:$0xff]  ;;  %v835_v42 = vld [vmem:[#allocation9 + $0x28] sm:$0xff]  ;;  %v836_v44 = vld [vmem:[#allocation9 + $0x30] sm:$0xff] }
  0x59   :  { %v837_v45 = vld [vmem:[#allocation9 + $0x38] sm:$0xff] }
  0x5a   :  { %1494 = vmatpush3.bf16.msra.mxu0 %v1491_v22  ;;  %1522 = vmatpush3.bf16.msra.mxu1 %v2004_v28 }
  0x5b   :  { %1496 = vmatprep.subr.bf16.mxu0 %v1495_v29  ;;  %1523 = vmatprep.subr.bf16.mxu1 %v1877_v0 }
  0x5e   :  { %1498 = vmatpush3.bf16.msra.mxu0 %v1495_v29  ;;  %1525 = vmatpush3.bf16.msra.mxu1 %v2008_v34 }
  0x5f   :  { %1500 = vmatprep.subr.bf16.mxu0 %v1499_v35  ;;  %1526 = vmatprep.subr.bf16.mxu1 %v1877_v0 }
  0x62   :  { %1502 = vmatpush3.bf16.msra.mxu0 %v1499_v35  ;;  %1528 = vmatpush3.bf16.msra.mxu1 %v2012_v40  ;;  %v830_v35 = vld [vmem:[#allocation9] sm:$0xff] }
  0x63   :  { %1504 = vmatprep.subr.bf16.mxu0 %v1503_v41  ;;  %1529 = vmatprep.subr.bf16.mxu1 %v1877_v0  ;;  %v1704_v38 = vpack.c.bf16 %v831_v36, %v830_v35 }
  0x66   :  { %1506 = vmatpush3.bf16.msra.mxu0 %v1503_v41  ;;  %1531 = vmatpush3.bf16.msra.mxu1 %v2016_v46  ;;  %v834_v41 = vld [vmem:[#allocation9 + $0x20] sm:$0xff] }
  0x67   :  { %1508 = vmatprep.subr.bf16.mxu0 %v1507_v47  ;;  %1532 = vmatprep.subr.bf16.mxu1 %v1877_v0  ;;  %v1710_v43 = vpack.c.bf16 %v835_v42, %v834_v41 }
  0x6a   :  { %1510 = vmatpush3.bf16.msra.mxu0 %v1507_v47  ;;  %1534 = vmatpush3.bf16.msra.mxu1 %v2020_v50  ;;  %v839_v47 = vld [vmem:[#allocation9 + $0x48] sm:$0xff] }
  0x6b   :  { %1535 = vmatprep.subr.bf16.mxu0 %v1877_v0  ;;  %1559 = vmatprep.subr.bf16.mxu1 %v1877_v0 }
  0x6d   :  { %1153 = vmatmul.mubr.f32.vlgmr.msra.gmra.mrb[0].mxu0 %v80_v51  ;;  %1197 = vmatmul.mubr.f32.vlgmr.msra.gmra.mrb[0].mxu1 %v1879_v1 }
  0x6e   :  { %1537 = vmatpush3.bf16.msra.mxu0 %v1993_v9  ;;  %1561 = vmatpush3.bf16.msra.mxu1 %v1993_v9 }
  0x6f   :  { %1538 = vmatprep.subr.bf16.mxu0 %v1877_v0  ;;  %1562 = vmatprep.subr.bf16.mxu1 %v1877_v0 }
  0x70   :  { %1266 = vmatprep.mubr.msk.f32.mxu1 %vm1878_vm0, %v1879_v1  ;;  %1155 = vmatprep.mubr.f32.mxu0 %v81_v52 }
  0x71   :  { %1156 = vmatmul.mubr.f32.gmra.mrb[2].mxu0 %v82_v53 }
  0x72   :  { %1540 = vmatpush3.bf16.msra.mxu0 %v1996_v15  ;;  %1564 = vmatpush3.bf16.msra.mxu1 %v1996_v15 }
  0x73   :  { %1541 = vmatprep.subr.bf16.mxu0 %v1877_v0  ;;  %1565 = vmatprep.subr.bf16.mxu1 %v1877_v0 }
  0x74   :  { %1158 = vmatprep.mubr.f32.mxu0 %v83_v54  ;;  %v840_v54 = vld [vmem:[#allocation9 + $0x50] sm:$0xff] }
  0x75   :  { %1159 = vmatmul.mubr.f32.gmra.mrb[4].mxu0 %v84_v55  ;;  %v841_v55 = vld [vmem:[#allocation9 + $0x58] sm:$0xff] }
  0x76   :  { %1543 = vmatpush3.bf16.msra.mxu0 %v2000_v21  ;;  %1567 = vmatpush3.bf16.msra.mxu1 %v2000_v21 }
  0x77   :  { %1544 = vmatprep.subr.bf16.mxu0 %v1877_v0  ;;  %1568 = vmatprep.subr.bf16.mxu1 %v1877_v0 }
  0x78   :  { %1161 = vmatprep.mubr.f32.mxu0 %v85_v56  ;;  %v1719_v56 = vpack.c.bf16 %v841_v55, %v840_v54 }
  0x79   :  { %1162 = vmatmul.mubr.f32.gmra.mrb[6].mxu0 %v86_v57  ;;  %v842_v57 = vld [vmem:[#allocation9 + $0x60] sm:$0xff] }
  0x7a   :  { %1546 = vmatpush3.bf16.msra.mxu0 %v2004_v28  ;;  %1570 = vmatpush3.bf16.msra.mxu1 %v2004_v28 }
  0x7b   :  { %1547 = vmatprep.subr.bf16.mxu0 %v1877_v0  ;;  %1571 = vmatprep.subr.bf16.mxu1 %v1877_v0 }
  0x7c   :  { %1231 = vmatprep.mubr.msk.f32.mxu0 %vm1878_vm0, %v1879_v1 }
  0x7e   :  { %1549 = vmatpush3.bf16.msra.mxu0 %v2008_v34  ;;  %1573 = vmatpush3.bf16.msra.mxu1 %v2008_v34 }
  0x7f   :  { %1550 = vmatprep.subr.bf16.mxu0 %v1877_v0  ;;  %1574 = vmatprep.subr.bf16.mxu1 %v1877_v0 }
  0x82   :  { %1552 = vmatpush3.bf16.msra.mxu0 %v2012_v40  ;;  %1576 = vmatpush3.bf16.msra.mxu1 %v2012_v40 }
  0x83   :  { %1553 = vmatprep.subr.bf16.mxu0 %v1877_v0  ;;  %1577 = vmatprep.subr.bf16.mxu1 %v1877_v0 }
  0x86   :  { %1555 = vmatpush3.bf16.msra.mxu0 %v2016_v46  ;;  %1579 = vmatpush3.bf16.msra.mxu1 %v2016_v46 }
  0x87   :  { %1556 = vmatprep.subr.bf16.mxu0 %v1877_v0  ;;  %1580 = vmatprep.subr.bf16.mxu1 %v1877_v0 }
  0x8a   :  { %1558 = vmatpush3.bf16.msra.mxu0 %v2020_v50  ;;  %1582 = vmatpush3.bf16.msra.mxu1 %v2020_v50 }
  0x8b   :  { %1583 = vmatprep.subr.bf16.mxu0 %v1877_v0  ;;  %1607 = vmatprep.subr.bf16.mxu1 %v1877_v0 }
 0x140   :  { %v1154_v59 = vpop.f32.mrb[0].mxu0  ;;  %v306_v60 = vpop.f32.mrb[0].mxu1 }
 0x141   :  { %v176_v61 = vpop.f32.mrb[1].mxu0  ;;  %v1198_v62 = vpop.f32.mrb[1].mxu1  ;;  %v182_v11 = vadd.f32 %v1154_v59, %v2066_v58  ;;  %v843_v59 = vld [vmem:[#allocation9 + $0x68] sm:$0xff] }
 0x142   :  { %v177_v63 = vadd.f32 %v2066_v58, %v176_v61  ;;  %v844_v61 = vld [vmem:[#allocation9 + $0x70] sm:$0xff]  ;;  %v845_v62 = vld [vmem:[#allocation9 + $0x78] sm:$0xff] }
 0x144   :  { %v310_v2 = vadd.f32 %v306_v60, %v177_v63  ;;  %v1157_v4 = vpop.f32.mrb[2].mxu0  ;;  %v1722_v60 = vpack.c.bf16 %v843_v59, %v842_v57  ;;  %v1725_v63 = vpack.c.bf16 %v845_v62, %v844_v61 }
 0x145   :  { %v186_v5 = vpop.f32.mrb[3].mxu0  ;;  %v192_v23 = vadd.f32 %v1157_v4, %v2066_v58 }
 0x146   :  { %1737 = vtanh.f32 %v310_v2  ;;  %v187_v17 = vadd.f32 %v2066_v58, %v186_v5 }
 0x148   :  { %v2087_v6 = vpop.f32.mrb[4].mxu0 }
 0x149   :  { %v2089_v7 = vpop.f32.mrb[5].mxu0 }
 0x14a   :  { %v197_v29 = vadd.f32 %v2066_v58, %v2089_v7  ;;  %v942_v7 = vld [vmem:[%s2206_s5] ss:$0 sm:$0xff] }
 0x14c   :  { %v2091_v8 = vpop.f32.mrb[6].mxu0 }
 0x14d   :  { %v2093_v10 = vpop.f32.mrb[7].mxu0  ;;  %v212_v2 = vadd.f32 %v2091_v8, %v2066_v58 }
 0x14e   :  { %v207_v49 = vadd.f32 %v2066_v58, %v2093_v10 }
 0x150   :  { %v1738_v3 = vpop.eup %1737 }
 0x151   :  { %1232 = vmatmul.mubr.f32.vlgmr.msra.gmra.mrb[8].mxu0 %v1738_v3 }
 0x152   :  { %1585 = vmatpush3.bf16.msra.mxu0 %v1993_v9  ;;  %1301 = vmatprep.mubr.msk.f32.mxu0 %vm1878_vm0, %v1879_v1 }
 0x153   :  { %1586 = vmatprep.subr.bf16.mxu0 %v1877_v0 }
 0x156   :  { %1588 = vmatpush3.bf16.msra.mxu0 %v1996_v15 }
 0x157   :  { %1589 = vmatprep.subr.bf16.mxu0 %v1877_v0 }
 0x15a   :  { %1591 = vmatpush3.bf16.msra.mxu0 %v2000_v21 }
 0x15b   :  { %1592 = vmatprep.subr.bf16.mxu0 %v1877_v0 }
 0x15e   :  { %1594 = vmatpush3.bf16.msra.mxu0 %v2004_v28 }
 0x15f   :  { %1595 = vmatprep.subr.bf16.mxu0 %v1877_v0 }
 0x162   :  { %1597 = vmatpush3.bf16.msra.mxu0 %v2008_v34 }
 0x163   :  { %1598 = vmatprep.subr.bf16.mxu0 %v1877_v0 }
 0x166   :  { %1600 = vmatpush3.bf16.msra.mxu0 %v2012_v40 }
 0x167   :  { %1601 = vmatprep.subr.bf16.mxu0 %v1877_v0 }
 0x16a   :  { %1603 = vmatpush3.bf16.msra.mxu0 %v2016_v46 }
 0x16b   :  { %1604 = vmatprep.subr.bf16.mxu0 %v1877_v0 }
 0x16e   :  { %1606 = vmatpush3.bf16.msra.mxu0 %v2020_v50 }
 0x16f   :  { %1631 = vmatprep.subr.bf16.mxu0 %v1877_v0 }
 0x224   :  { %v380_v12 = vpop.f32.mrb[8].mxu0 }
 0x225   :  { %v384_v13 = vadd.f32 %v380_v12, %v182_v11  ;;  %v1233_v14 = vpop.f32.mrb[9].mxu0 }
 0x227   :  { %1739 = vtanh.f32 %v384_v13 }
 0x231   :  { %v1740_v16 = vpop.eup %1739 }
 0x232   :  { %1267 = vmatmul.mubr.f32.vlgmr.msra.gmra.mrb[2].mxu1 %v1740_v16 }
 0x233   :  { %1609 = vmatpush3.bf16.msra.mxu1 %v1993_v9  ;;  %1336 = vmatprep.mubr.msk.f32.mxu1 %vm1878_vm0, %v1879_v1 }
 0x234   :  { %1610 = vmatprep.subr.bf16.mxu1 %v1877_v0 }
 0x237   :  { %1612 = vmatpush3.bf16.msra.mxu1 %v1996_v15 }
 0x238   :  { %1613 = vmatprep.subr.bf16.mxu1 %v1877_v0 }
 0x23b   :  { %1615 = vmatpush3.bf16.msra.mxu1 %v2000_v21 }
 0x23c   :  { %1616 = vmatprep.subr.bf16.mxu1 %v1877_v0 }
 0x23f   :  { %1618 = vmatpush3.bf16.msra.mxu1 %v2004_v28 }
 0x240   :  { %1619 = vmatprep.subr.bf16.mxu1 %v1877_v0 }
 0x243   :  { %1621 = vmatpush3.bf16.msra.mxu1 %v2008_v34 }
 0x244   :  { %1622 = vmatprep.subr.bf16.mxu1 %v1877_v0 }
 0x247   :  { %1624 = vmatpush3.bf16.msra.mxu1 %v2012_v40 }
 0x248   :  { %1625 = vmatprep.subr.bf16.mxu1 %v1877_v0 }
 0x24b   :  { %1627 = vmatpush3.bf16.msra.mxu1 %v2016_v46 }
 0x24c   :  { %1628 = vmatprep.subr.bf16.mxu1 %v1877_v0 }
 0x24f   :  { %1630 = vmatpush3.bf16.msra.mxu1 %v2020_v50 }
 0x250   :  { %1655 = vmatprep.subr.bf16.mxu1 %v1877_v0 }
 0x305   :  { %v454_v18 = vpop.f32.mrb[2].mxu1 }
 0x306   :  { %v458_v19 = vadd.f32 %v454_v18, %v187_v17  ;;  %v1268_v20 = vpop.f32.mrb[3].mxu1 }
 0x308   :  { %1741 = vtanh.f32 %v458_v19 }
 0x312   :  { %v1742_v22 = vpop.eup %1741 }
 0x313   :  { %1302 = vmatmul.mubr.f32.vlgmr.msra.gmra.mrb[10].mxu0 %v1742_v22 }
 0x314   :  { %1633 = vmatpush3.bf16.msra.mxu0 %v1993_v9  ;;  %1371 = vmatprep.mubr.msk.f32.mxu0 %vm1878_vm0, %v1879_v1 }
 0x315   :  { %1634 = vmatprep.subr.bf16.mxu0 %v1877_v0 }
 0x318   :  { %1636 = vmatpush3.bf16.msra.mxu0 %v1996_v15 }
 0x319   :  { %1637 = vmatprep.subr.bf16.mxu0 %v1877_v0 }
 0x31c   :  { %1639 = vmatpush3.bf16.msra.mxu0 %v2000_v21 }
 0x31d   :  { %1640 = vmatprep.subr.bf16.mxu0 %v1877_v0 }
 0x320   :  { %1642 = vmatpush3.bf16.msra.mxu0 %v2004_v28 }
 0x321   :  { %1643 = vmatprep.subr.bf16.mxu0 %v1877_v0 }
 0x324   :  { %1645 = vmatpush3.bf16.msra.mxu0 %v2008_v34 }
 0x325   :  { %1646 = vmatprep.subr.bf16.mxu0 %v1877_v0 }
 0x328   :  { %1648 = vmatpush3.bf16.msra.mxu0 %v2012_v40 }
 0x329   :  { %1649 = vmatprep.subr.bf16.mxu0 %v1877_v0 }
 0x32c   :  { %1651 = vmatpush3.bf16.msra.mxu0 %v2016_v46 }
 0x32d   :  { %1652 = vmatprep.subr.bf16.mxu0 %v1877_v0 }
 0x330   :  { %1654 = vmatpush3.bf16.msra.mxu0 %v2020_v50 }
 0x331   :  { %1679 = vmatprep.subr.bf16.mxu0 %v1877_v0 }
 0x3e6   :  { %v528_v24 = vpop.f32.mrb[10].mxu0 }
 0x3e7   :  { %v532_v25 = vadd.f32 %v528_v24, %v192_v23  ;;  %v1303_v26 = vpop.f32.mrb[11].mxu0 }
 0x3e9   :  { %1743 = vtanh.f32 %v532_v25 }
 0x3f3   :  { %v1744_v27 = vpop.eup %1743 }
 0x3f4   :  { %1337 = vmatmul.mubr.f32.vlgmr.msra.gmra.mrb[4].mxu1 %v1744_v27 }
 0x3f5   :  { %1657 = vmatpush3.bf16.msra.mxu1 %v1993_v9  ;;  %1406 = vmatprep.mubr.msk.f32.mxu1 %vm1878_vm0, %v1879_v1 }
 0x3f6   :  { %1658 = vmatprep.subr.bf16.mxu1 %v1877_v0 }
 0x3f9   :  { %1660 = vmatpush3.bf16.msra.mxu1 %v1996_v15 }
 0x3fa   :  { %1661 = vmatprep.subr.bf16.mxu1 %v1877_v0 }
 0x3fd   :  { %1663 = vmatpush3.bf16.msra.mxu1 %v2000_v21 }
 0x3fe   :  { %1664 = vmatprep.subr.bf16.mxu1 %v1877_v0 }
 0x401   :  { %1666 = vmatpush3.bf16.msra.mxu1 %v2004_v28 }
 0x402   :  { %1667 = vmatprep.subr.bf16.mxu1 %v1877_v0 }
 0x405   :  { %1669 = vmatpush3.bf16.msra.mxu1 %v2008_v34 }
 0x406   :  { %1670 = vmatprep.subr.bf16.mxu1 %v1877_v0 }
 0x409   :  { %1672 = vmatpush3.bf16.msra.mxu1 %v2012_v40 }
 0x40a   :  { %1673 = vmatprep.subr.bf16.mxu1 %v1877_v0 }
 0x40d   :  { %1675 = vmatpush3.bf16.msra.mxu1 %v2016_v46 }
 0x40e   :  { %1676 = vmatprep.subr.bf16.mxu1 %v1877_v0 }
 0x411   :  { %1678 = vmatpush3.bf16.msra.mxu1 %v2020_v50 }
 0x412   :  { %1703 = vmatprep.subr.bf16.mxu1 %v1877_v0 }
 0x4c7   :  { %v602_v30 = vpop.f32.mrb[4].mxu1 }
 0x4c8   :  { %v606_v31 = vadd.f32 %v602_v30, %v197_v29  ;;  %v1338_v32 = vpop.f32.mrb[5].mxu1 }
 0x4ca   :  { %1745 = vtanh.f32 %v606_v31 }
 0x4d4   :  { %v1746_v33 = vpop.eup %1745 }
 0x4d5   :  { %1372 = vmatmul.mubr.f32.vlgmr.msra.gmra.mrb[12].mxu0 %v1746_v33 }
 0x4d6   :  { %1681 = vmatpush3.bf16.msra.mxu0 %v1993_v9  ;;  %1441 = vmatprep.mubr.msk.f32.mxu0 %vm1878_vm0, %v1879_v1  ;;  %v202_v9 = vadd.f32 %v2087_v6, %v2066_v58 }
 0x4d7   :  { %1682 = vmatprep.subr.bf16.mxu0 %v1877_v0 }
 0x4da   :  { %1684 = vmatpush3.bf16.msra.mxu0 %v1996_v15 }
 0x4db   :  { %1685 = vmatprep.subr.bf16.mxu0 %v1877_v0 }
 0x4de   :  { %1687 = vmatpush3.bf16.msra.mxu0 %v2000_v21 }
 0x4df   :  { %1688 = vmatprep.subr.bf16.mxu0 %v1877_v0 }
 0x4e2   :  { %1690 = vmatpush3.bf16.msra.mxu0 %v2004_v28 }
 0x4e3   :  { %1691 = vmatprep.subr.bf16.mxu0 %v1877_v0 }
 0x4e6   :  { %1693 = vmatpush3.bf16.msra.mxu0 %v2008_v34 }
 0x4e7   :  { %1694 = vmatprep.subr.bf16.mxu0 %v1877_v0 }
 0x4ea   :  { %1696 = vmatpush3.bf16.msra.mxu0 %v2012_v40  ;;  %v1707_v40 = vpack.c.bf16 %v833_v39, %v832_v37 }
 0x4eb   :  { %1697 = vmatprep.subr.bf16.mxu0 %v1877_v0 }
 0x4ee   :  { %1699 = vmatpush3.bf16.msra.mxu0 %v2016_v46  ;;  %v1713_v46 = vpack.c.bf16 %v837_v45, %v836_v44 }
 0x4ef   :  { %1700 = vmatprep.subr.bf16.mxu0 %v1877_v0 }
 0x4f2   :  { %1702 = vmatpush3.bf16.msra.mxu0 %v2020_v50 }
 0x5a8   :  { %v676_v15 = vpop.f32.mrb[12].mxu0 }
 0x5a9   :  { %v680_v21 = vadd.f32 %v676_v15, %v202_v9  ;;  %v1373_v28 = vpop.f32.mrb[13].mxu0 }
 0x5ab   :  { %1747 = vtanh.f32 %v680_v21 }
 0x5b5   :  { %v1748_v34 = vpop.eup %1747 }
 0x5b6   :  { %1407 = vmatmul.mubr.f32.vlgmr.msra.gmra.mrb[6].mxu1 %v1748_v34 }
 0x5b7   :  { %1476 = vmatprep.mubr.msk.f32.mxu1 %vm1878_vm0, %v1879_v1  ;;  %1705 = vmatpush3.bf16.msra.mxu1 %v1704_v38  ;;  %v838_v1 = vld [vmem:[#allocation9 + $0x40] sm:$0xff] }
 0x5b8   :  { %1706 = vmatprep.subr.bf16.mxu1 %v1877_v0  ;;  %v1716_v48 = vpack.c.bf16 %v839_v47, %v838_v1 }
 0x5bb   :  { %1708 = vmatpush3.bf16.msra.mxu1 %v1707_v40 }
 0x5bc   :  { %1709 = vmatprep.subr.bf16.mxu1 %v1877_v0 }
 0x5bf   :  { %1711 = vmatpush3.bf16.msra.mxu1 %v1710_v43 }
 0x5c0   :  { %1712 = vmatprep.subr.bf16.mxu1 %v1877_v0 }
 0x5c3   :  { %1714 = vmatpush3.bf16.msra.mxu1 %v1713_v46 }
 0x5c4   :  { %1715 = vmatprep.subr.bf16.mxu1 %v1877_v0 }
 0x5c7   :  { %1717 = vmatpush3.bf16.msra.mxu1 %v1716_v48 }
 0x5c8   :  { %1718 = vmatprep.subr.bf16.mxu1 %v1877_v0 }
 0x5cb   :  { %1720 = vmatpush3.bf16.msra.mxu1 %v1719_v56 }
 0x5cc   :  { %1721 = vmatprep.subr.bf16.mxu1 %v1877_v0 }
 0x5cf   :  { %1723 = vmatpush3.bf16.msra.mxu1 %v1722_v60 }
 0x5d0   :  { %1724 = vmatprep.subr.bf16.mxu1 %v1877_v0 }
 0x5d3   :  { %1726 = vmatpush3.bf16.msra.mxu1 %v1725_v63 }
 0x689   :  { %v750_v50 = vpop.f32.mrb[6].mxu1 }
 0x68a   :  { %v754_v51 = vadd.f32 %v750_v50, %v207_v49  ;;  %v1408_v52 = vpop.f32.mrb[7].mxu1 }
 0x68c   :  { %1749 = vtanh.f32 %v754_v51 }
 0x696   :  { %v1750_v53 = vpop.eup %1749 }
 0x697   :  { %1442 = vmatmul.mubr.f32.vlgmr.msra.gmra.mrb[14].mxu0 %v1750_v53 }
 0x76a   :  { %v824_v3 = vpop.f32.mrb[14].mxu0 }
 0x76b   :  { %v828_v4 = vadd.f32 %v824_v3, %v212_v2  ;;  %v1443_v5 = vpop.f32.mrb[15].mxu0 }
 0x76d   :  { %1751 = vtanh.f32 %v828_v4 }
 0x777   :  { %v1752_v6 = vpop.eup %1751 }
 0x778   :  { %1477 = vmatmul.mubr.f32.vlgmr.msra.gmra.mrb[8].mxu1 %v1752_v6 }
 0x84b   :  { %v919_v10 = vpop.f32.mrb[8].mxu1 }
 0x84c   :  { %v920_v11 = vadd.f32 %v942_v7, %v919_v10  ;;  %v1478_v12 = vpop.f32.mrb[9].mxu1 }
 0x84e   :  { %923 = vst [vmem:[#allocation11] sm:$0xff] %v920_v11 }
 0x84f   :  { %1852 = shalt.err (!%p1849_p8)
}
 0x850   :  { %s1853_s27 = scalar_lea.hbm %s2207_s6, 128 }
 0x851   :  { %p1854_p9 = scmp.ne.s32.totalorder %s2207_s6, %s1853_s27  ;;  %p1857_p10 = scmp.lt.u32.totalorder %s1853_s27, %s2207_s6 }
 0x853   :  { %p1859_p11 = pnand %p1857_p10, %p1854_p9 }
 0x855   :  { %1862 = shalt.err (!%p1859_p11)
}
 0x856   :  { %933 = dma.vmem_to_hbm [thread:$0]  %s931_s22, 128, %s2207_s6, [#allocation5]  }
 0x857   :  { %1869 = dma.done.wait [#allocation5], 128  }
 0x858   :  { %1870 = vsyncadd [#allocation5], 4294967168 }
 0x859   :  { %937 = vsyncpa [#allocation4], 1 }
 0x85a   :  { %938 = vsyncpa [#allocation7], 1 }
 0x85b   :  { %939 = vsyncpa [#allocation10], 1 }
 0x85c   :  { %940 = vsyncpa [#allocation5], 1 }

</bundles_post_ra>
